<compile_context>
chip_gen: v6e
topology: v6e:2x2x1
jax: 0.10.0
libtpu: 0.0.40
codegen_flags: <defaults>
</compile_context>

<pallas_src>
import functools

import jax
import jax.numpy as jnp
from jax.experimental import pallas as pl
from jax.experimental.pallas import tpu as pltpu


def _round_up(x: int, m: int) -> int:
    return (x + m - 1) // m * m


# ---------------------------------------------------------------------------
# Tile / VMEM planning
# ---------------------------------------------------------------------------
def _plan_tiles(n, f_pad, h_pad, o_pad):
    """Returns (n_pad, tm, tk, resident, vmem_limit_bytes)."""
    budget = 40 << 20                      # v7x-safe cap (64 MiB physical VMEM)
    wide = max(h_pad, o_pad)

    n_min = max(_round_up(n, 128), 128)    # lane-dense even for tiny graphs
    if n_min <= 1024:
        n_pad = n_min
        tk = n_pad                         # single K tile
        # >=2 row tiles when divisible: v7x's two TCs share the "parallel" axis
        tm = n_pad // 2 if (n_pad >= 512 and n_pad % 256 == 0) else n_pad
    else:
        tk = 1024                          # ~85% of HBM roofline vs ~63% at 256
        n_pad = _round_up(n, tk)
        tm = 512

    # Keep XW1 / HW2 fully VMEM-resident across row tiles when small enough.
    resident = n_pad * wide * 2 <= (8 << 20)

    def footprint(tm_, tk_, res_):
        a_tiles = 2 * tm_ * tk_ * 2                     # A_hat tile, 2 buffers, bf16
        xw = 2 * (n_pad if res_ else tk_) * wide * 2    # XW1/HW2 blocks (2 buffers)
        acc = tm_ * wide * 4                            # f32 accumulator scratch
        out_tiles = 2 * tm_ * wide * 4                  # output tile (f32 worst), x2
        weights = 2 * h_pad * o_pad * 2 + 2 * (h_pad + o_pad) * 4
        return a_tiles + xw + acc + out_tiles + weights

    while footprint(tm, tk, resident) > budget and tm > 128:
        nt = tm // 2
        tm = nt if (nt % 128 == 0 and n_pad % nt == 0) else 128
    while footprint(tm, tk, resident) > budget and tk > 256 and n_pad % (tk // 2) == 0:
        tk //= 2
    if footprint(tm, tk, resident) > budget:
        resident = False

    p1 = 2 * tm * f_pad * 2 + 2 * f_pad * h_pad * 2 + 2 * tm * h_pad * 2
    need = max(footprint(tm, tk, resident), p1)
    vmem_limit = int(min(48 << 20, max(32 << 20, need + (8 << 20))))
    return n_pad, tm, tk, resident, vmem_limit


# ---------------------------------------------------------------------------
# Kernel 1: per-row-tile feature transform  XW = X @ W1
# ---------------------------------------------------------------------------
def _feature_kernel(x_ref, w_ref, o_ref):
    o_ref[...] = jnp.dot(
        x_ref[...], w_ref[...], preferred_element_type=jnp.float32
    ).astype(o_ref.dtype)


# ---------------------------------------------------------------------------
# Kernel 2: layer-1 aggregation + ReLU, with layer-2 feature transform fused
#   acc = sum_k A[i, k] @ XW[k]     (K reduction, f32 accumulator scratch)
#   out = relu(acc + b1) @ W2       (epilogue, once per row tile)
# XW1 is either VMEM-resident (full-extent block, sliced with pl.ds) or streamed.
# ---------------------------------------------------------------------------
def _agg1_kernel(a_ref, xw_ref, b1_ref, w2_ref, o_ref, acc_ref, *, tk, resident):
    k = pl.program_id(1)

    @pl.when(k == 0)
    def _():
        acc_ref[...] = jnp.zeros_like(acc_ref)

    if resident:
        start = pl.multiple_of(k * tk, tk)
        xw = xw_ref[pl.ds(start, tk), :]
    else:
        xw = xw_ref[...]

    acc_ref[...] += jnp.dot(a_ref[...], xw, preferred_element_type=jnp.float32)

    @pl.when(k == pl.num_programs(1) - 1)
    def _():
        h1 = jnp.maximum(acc_ref[...] + b1_ref[...], 0.0)
        o_ref[...] = jnp.dot(
            h1.astype(w2_ref.dtype), w2_ref[...],
            preferred_element_type=jnp.float32,
        ).astype(o_ref.dtype)


# ---------------------------------------------------------------------------
# Kernel 3: layer-2 aggregation + bias + masked log_softmax over real lanes
# ---------------------------------------------------------------------------
def _agg2_kernel(a_ref, hw_ref, b2_ref, o_ref, acc_ref, *, tk, resident, out_dim):
    k = pl.program_id(1)

    @pl.when(k == 0)
    def _():
        acc_ref[...] = jnp.zeros_like(acc_ref)

    if resident:
        start = pl.multiple_of(k * tk, tk)
        hw = hw_ref[pl.ds(start, tk), :]
    else:
        hw = hw_ref[...]

    acc_ref[...] += jnp.dot(a_ref[...], hw, preferred_element_type=jnp.float32)

    @pl.when(k == pl.num_programs(1) - 1)
    def _():
        h2 = acc_ref[...] + b2_ref[...]
        lane = jax.lax.broadcasted_iota(jnp.int32, h2.shape, 1)
        valid = lane < out_dim
        h2 = jnp.where(valid, h2, -1e30)       # padded lanes never win max / sum
        m = jnp.max(h2, axis=1, keepdims=True)
        z = h2 - m
        lse = jnp.log(jnp.sum(jnp.exp(z), axis=1, keepdims=True))
        o_ref[...] = jnp.where(valid, z - lse, 0.0)


# ---------------------------------------------------------------------------
# Glue: symmetrically-normalised adjacency (PyG gcn_norm semantics: duplicate
# edges count, self loops added only where missing) built edge-wise and scattered
# directly into the padded low-precision buffer — no dense f32 N^2 intermediate.
# ---------------------------------------------------------------------------
def _normalized_adjacency_padded(n, n_pad, edge_index, dtype):
    src, dst = edge_index[0], edge_index[1]
    ones = jnp.ones(src.shape, jnp.float32)
    deg = jnp.zeros((n,), jnp.float32).at[dst].add(ones)            # in-degree (rows)
    self_cnt = jnp.zeros((n,), jnp.float32).at[dst].add(
        jnp.where(src == dst, 1.0, 0.0))
    missing_self = self_cnt == 0.0
    deg = deg + jnp.where(missing_self, 1.0, 0.0)
    d_is = jnp.where(deg > 0.0, jax.lax.rsqrt(deg), 0.0)
    edge_w = (d_is[dst] * d_is[src]).astype(dtype)
    self_w = jnp.where(missing_self, d_is * d_is, 0.0).astype(dtype)
    node = jnp.arange(n)
    a_p = jnp.zeros((n_pad, n_pad), dtype)
    a_p = a_p.at[dst, src].add(edge_w)
    a_p = a_p.at[node, node].add(self_w)
    return a_p
    # TODO(synk): for large sparse graphs, replace the dense adjacency with a
    # PrefetchScalarGridSpec neighbor-list gather/segment-sum kernel, and consider
    # int8 (v5e/v6e) / fp8 (v7x) storage of A_hat to halve the dominant HBM stream.


def gnn_forward(x, edge_index, w1, b1, w2, b2):
    """x: [N, F_in] f32, edge_index: [2, E] int32 (source, target)."""
    n, f_in = x.shape
    hid = w1.shape[1]
    out_dim = w2.shape[1]

    f_pad = _round_up(f_in, 128)
    h_pad = _round_up(hid, 128)
    o_pad = _round_up(out_dim, 128)
    n_pad, tm, tk, resident, vmem_limit = _plan_tiles(n, f_pad, h_pad, o_pad)

    bf = jnp.bfloat16
    a_p = _normalized_adjacency_padded(n, n_pad, edge_index, bf)
    x_p = jnp.zeros((n_pad, f_pad), bf).at[:n, :f_in].set(x.astype(bf))
    w1_p = jnp.zeros((f_pad, h_pad), bf).at[:f_in, :hid].set(w1.astype(bf))
    w2_p = jnp.zeros((h_pad, o_pad), bf).at[:hid, :out_dim].set(w2.astype(bf))
    b1_p = jnp.zeros((1, h_pad), jnp.float32).at[0, :hid].set(b1)
    b2_p = jnp.zeros((1, o_pad), jnp.float32).at[0, :out_dim].set(b2)

    n_row = n_pad // tm
    n_k = n_pad // tk

    cparams_1d = pltpu.CompilerParams(
        dimension_semantics=("parallel",), vmem_limit_bytes=vmem_limit)
    cparams_2d = pltpu.CompilerParams(
        dimension_semantics=("parallel", "arbitrary"), vmem_limit_bytes=vmem_limit)

    # ---- pass 1: XW1 = X @ W1 ----
    xw1 = pl.pallas_call(
        _feature_kernel,
        out_shape=jax.ShapeDtypeStruct((n_pad, h_pad), bf),
        grid=(n_row,),
        in_specs=[
            pl.BlockSpec((tm, f_pad), lambda i: (i, 0)),
            pl.BlockSpec((f_pad, h_pad), lambda i: (0, 0)),
        ],
        out_specs=pl.BlockSpec((tm, h_pad), lambda i: (i, 0)),
        compiler_params=cparams_1d,
        cost_estimate=pl.CostEstimate(
            flops=2 * n_pad * f_pad * h_pad, transcendentals=0,
            bytes_accessed=2 * (n_pad * f_pad + f_pad * h_pad + n_pad * h_pad)),
    )(x_p, w1_p)

    # ---- pass 2: HW2 = relu(A_hat @ XW1 + b1) @ W2 ----
    # XW1: full-extent constant-index block (stays resident in VMEM across row
    # tiles, no per-row-tile HBM re-read); fall back to streamed K blocks if big.
    xw_spec = (pl.BlockSpec((n_pad, h_pad), lambda i, k: (0, 0)) if resident
               else pl.BlockSpec((tk, h_pad), lambda i, k: (k, 0)))
    # TODO(synk): if profiling still shows exposed DMA on the A stream, deepen its
    # pipeline with pipeline_mode=pl.Buffered(3) on the A BlockSpec.
    hw2 = pl.pallas_call(
        functools.partial(_agg1_kernel, tk=tk, resident=resident),
        out_shape=jax.ShapeDtypeStruct((n_pad, o_pad), bf),
        grid=(n_row, n_k),
        in_specs=[
            pl.BlockSpec((tm, tk), lambda i, k: (i, k)),
            xw_spec,
            pl.BlockSpec((1, h_pad), lambda i, k: (0, 0)),      # loaded once
            pl.BlockSpec((h_pad, o_pad), lambda i, k: (0, 0)),  # loaded once
        ],
        out_specs=pl.BlockSpec((tm, o_pad), lambda i, k: (i, 0)),
        scratch_shapes=[pltpu.VMEM((tm, h_pad), jnp.float32)],
        compiler_params=cparams_2d,
        cost_estimate=pl.CostEstimate(
            flops=2 * n_pad * n_pad * h_pad + 2 * n_pad * h_pad * o_pad,
            transcendentals=0,
            bytes_accessed=2 * (n_pad * n_pad + n_pad * h_pad
                                + h_pad * o_pad + n_pad * o_pad)),
    )(a_p, xw1, b1_p, w2_p)

    # ---- pass 3: OUT = log_softmax(A_hat @ HW2 + b2) ----
    hw_spec = (pl.BlockSpec((n_pad, o_pad), lambda i, k: (0, 0)) if resident
               else pl.BlockSpec((tk, o_pad), lambda i, k: (k, 0)))
    out_p = pl.pallas_call(
        functools.partial(_agg2_kernel, tk=tk, resident=resident, out_dim=out_dim),
        out_shape=jax.ShapeDtypeStruct((n_pad, o_pad), jnp.float32),
        grid=(n_row, n_k),
        in_specs=[
            pl.BlockSpec((tm, tk), lambda i, k: (i, k)),
            hw_spec,
            pl.BlockSpec((1, o_pad), lambda i, k: (0, 0)),
        ],
        out_specs=pl.BlockSpec((tm, o_pad), lambda i, k: (i, 0)),
        scratch_shapes=[pltpu.VMEM((tm, o_pad), jnp.float32)],
        compiler_params=cparams_2d,
        cost_estimate=pl.CostEstimate(
            flops=2 * n_pad * n_pad * o_pad,
            transcendentals=n_pad * o_pad,
            bytes_accessed=2 * (n_pad * n_pad + n_pad * o_pad) + 4 * n_pad * o_pad),
    )(a_p, hw2, b2_p)

    # NOTE: padded rows (>= n) carry garbage log_softmax values and are sliced away;
    # any fused consumer of the padded output must re-apply the row mask.
    return out_p[:n, :out_dim]


# ---------------------------------------------------------------------------
# Pure-JAX f32 reference (dense) — used only for the correctness check below.
# ---------------------------------------------------------------------------
def _dense_normalized_adjacency_ref(n, edge_index):
    src, dst = edge_index[0], edge_index[1]
    adj = jnp.zeros((n, n), jnp.float32).at[dst, src].add(1.0)
    diag = jnp.diagonal(adj)
    adj = adj + jnp.diag(jnp.where(diag > 0.0, 0.0, 1.0))
    deg = jnp.sum(adj, axis=1)
    d_is = jnp.where(deg > 0.0, jax.lax.rsqrt(deg), 0.0)
    return (adj * d_is[:, None]) * d_is[None, :]


if __name__ == "__main__":
    # small shapes consistent with the module
    num_nodes = 16
    num_edges = 32
    input_dim, hidden_dim, output_dim = 8, 32, 8

    key = jax.random.PRNGKey(0)
    k_x, k_e1, k_e2, k_w1, k_w2 = jax.random.split(key, 5)

    x = jax.random.normal(k_x, (num_nodes, input_dim), dtype=jnp.float32)
    edge_index = jnp.stack(
        [
            jax.random.randint(k_e1, (num_edges,), 0, num_nodes),
            jax.random.randint(k_e2, (num_edges,), 0, num_nodes),
        ],
        axis=0,
    ).astype(jnp.int32)

    # deterministic glorot-style weight init, zero bias (GCNConv default bias=True)
    w1 = jax.random.uniform(
        k_w1, (input_dim, hidden_dim), jnp.float32, -1.0, 1.0
    ) * jnp.sqrt(6.0 / (input_dim + hidden_dim))
    b1 = jnp.zeros((hidden_dim,), jnp.float32)
    w2 = jax.random.uniform(
        k_w2, (hidden_dim, output_dim), jnp.float32, -1.0, 1.0
    ) * jnp.sqrt(6.0 / (hidden_dim + output_dim))
    b2 = jnp.zeros((output_dim,), jnp.float32)

    out = gnn_forward(x, edge_index, w1, b1, w2, b2)
    jax.block_until_ready(out)

    # sanity 1: shape + log_softmax rows sum to 1 in prob space
    assert out.shape == (num_nodes, output_dim)
    row_sums = jnp.sum(jnp.exp(out), axis=1)
    assert bool(jnp.all(jnp.abs(row_sums - 1.0) < 1e-4))

    # sanity 2: matches a pure-JAX f32 reference (bf16 MXU inputs => loose tolerance)
    a_ref = _dense_normalized_adjacency_ref(num_nodes, edge_index)
    h1 = jnp.maximum(a_ref @ (x @ w1) + b1, 0.0)
    h2 = a_ref @ (h1 @ w2) + b2
    ref = jax.nn.log_softmax(h2, axis=1)
    assert float(jnp.max(jnp.abs(out - ref))) < 0.1

    print("KERNEL_OK")
</pallas_src>

<mosaic_0001>
module attributes {stable_mosaic.version = 11 : i64} {
  func.func @_feature_kernel(%arg0: i32, %arg1: memref<128x128xbf16, #tpu.memory_space<vmem>>, %arg2: memref<128x128xbf16, #tpu.memory_space<vmem>>, %arg3: memref<128x128xbf16, #tpu.memory_space<vmem>>) attributes {dimension_semantics = [#tpu.dimension_semantics<parallel>], iteration_bounds = array<i64: 1>, scalar_prefetch = 0 : i64, scratch_operands = 0 : i64, tpu.core_type = #tpu.core_type<tc>, window_params = [{transform_indices = @transform_0, window_bounds = array<i64: 128, 128>}, {pipeline_mode = #tpu.pipeline_mode<synchronous>, transform_indices = @transform_1, window_bounds = array<i64: 128, 128>}, {transform_indices = @transform_2, window_bounds = array<i64: 128, 128>}]} {
    %c0 = arith.constant 0 : index
    %c0_0 = arith.constant 0 : index
    %0 = vector.load %arg1[%c0, %c0_0] : memref<128x128xbf16, #tpu.memory_space<vmem>>, vector<128x128xbf16>
    %c0_1 = arith.constant 0 : index
    %c0_2 = arith.constant 0 : index
    %1 = vector.load %arg2[%c0_1, %c0_2] : memref<128x128xbf16, #tpu.memory_space<vmem>>, vector<128x128xbf16>
    %cst = arith.constant dense<0.000000e+00> : vector<128x128xf32>
    %2 = tpu.matmul %0, %1, %cst {dimension_numbers = #tpu.dot_dimension_numbers<[1], [0], [0], [1], [0, 0, 1, 1], [], []>} : vector<128x128xbf16>, vector<128x128xbf16>, vector<128x128xf32> -> vector<128x128xf32>
    %3 = arith.truncf %2 : vector<128x128xf32> to vector<128x128xbf16>
    %c0_3 = arith.constant 0 : index
    %c0_4 = arith.constant 0 : index
    %4 = vector.load %arg3[%c0_3, %c0_4] : memref<128x128xbf16, #tpu.memory_space<vmem>>, vector<128x128xbf16>
    tpu.vector_store %arg3[%c0_3, %c0_4], %3 {strides = array<i32>} : memref<128x128xbf16, #tpu.memory_space<vmem>>, vector<128x128xbf16>,
    return
  }
  func.func @transform_0(%arg0: i32) -> (i32, i32) {
    %c0_i32 = arith.constant 0 : i32
    %c0_i32_0 = arith.constant 0 : i32
    return %arg0, %c0_i32 : i32, i32
  }
  func.func @transform_1(%arg0: i32) -> (i32, i32) {
    %c0_i32 = arith.constant 0 : i32
    %c0_i32_0 = arith.constant 0 : i32
    %c0_i32_1 = arith.constant 0 : i32
    return %c0_i32, %c0_i32_0 : i32, i32
  }
  func.func @transform_2(%arg0: i32) -> (i32, i32) {
    %c0_i32 = arith.constant 0 : i32
    %c0_i32_0 = arith.constant 0 : i32
    return %arg0, %c0_i32 : i32, i32
  }
}

</mosaic_0001>

<bundles_post_ra>
// kernel: tpu_custom_call.1
= control target key start
LH: loop header
LB: loop body
LE: loop exit
PB: predicated region body
PF: predicated region fallthrough
CT: control target
= control target key end

     0   :  { %7 = vsyncpa [#allocation3], 0  ;;  %s648_s0 = inlined_call_operand.hbm [shape: bf16[128,128], index: 0, kind: input, shape index: {}]   ;;  %s649_s1 = inlined_call_operand.hbm [shape: bf16[128,128], index: 1, kind: input, shape index: {}]   ;;  %s650_s2 = inlined_call_operand.hbm [shape: bf16[128,128], index: 2, kind: output, shape index: {}]  }
   0x1   :  { %8 = vsyncpa [#allocation6], 0 }
   0x2   :  { %9 = vsyncpa [#allocation4], 0  ;;  %s610_s9 = smov [#allocation2]  }
   0x3   :  { %s15_s10 = sshll.u32 %s610_s9, 4  ;;  %s16_s10 = int_to_ptr.vmem [resolvable:$true] %s15_s10 }
   0x4   :  { %s552_s11 = scalar_lea.vmem %s16_s10, 1024  ;;  %p557_p1 = scmp.lt.s32.totalorder %s16_s10, %s16_s10 }
   0x5   :  { %p553_p0 = scmp.ne.s32.totalorder %s16_s10, %s552_s11  ;;  %p558_p2 = scmp.lt.s32.totalorder %s552_s11, %s552_s11 }
   0x7   :  { %p559_p3 = por %p558_p2, %p557_p1 }
   0x9   :  { %p560_p4 = pnand %p559_p3, %p553_p0 }
   0xb   :  { %563 = shalt.err (!%p560_p4)
}
   0xc   :  { %s611_s12 = smov 64   ;;  %s612_s13 = smov 4  }
   0xd   :  { %21 = dma.hbm_to_vmem [thread:$0]  %s648_s0, 1024, %s16_s10, [#allocation3], %s611_s12, %s611_s12, %s612_s13  }
   0xe   :  { %s613_s16 = smov [#allocation5]  }
   0xf   :  { %s27_s17 = sshll.u32 %s613_s16, 4  ;;  %s28_s17 = int_to_ptr.vmem [resolvable:$true] %s27_s17 }
  0x10   :  { %s572_s18 = scalar_lea.vmem %s28_s17, 1024  ;;  %p577_p6 = scmp.lt.s32.totalorder %s28_s17, %s28_s17 }
  0x11   :  { %p573_p5 = scmp.ne.s32.totalorder %s28_s17, %s572_s18  ;;  %p578_p7 = scmp.lt.s32.totalorder %s572_s18, %s572_s18 }
  0x13   :  { %p579_p8 = por %p578_p7, %p577_p6 }
  0x15   :  { %p580_p9 = pnand %p579_p8, %p573_p5 }
  0x17   :  { %583 = shalt.err (!%p580_p9)
}
  0x18   :  { %33 = dma.hbm_to_vmem [thread:$0]  %s649_s1, 1024, %s28_s17, [#allocation6], %s611_s12, %s611_s12, %s612_s13  }
  0x19   :  { %604 = dma.done.wait [#allocation3], 1024  }
  0x1a   :  { %605 = vsyncadd [#allocation3], 4294966272 }
  0x1b   :  { %606 = dma.done.wait [#allocation6], 1024  }
  0x1c   :  { %607 = vsyncadd [#allocation6], 4294966272  ;;  %v528_v0 = vld [vmem:[#allocation5 + $0x38] sm:$0xff]   ;;  %v529_v1 = vld [vmem:[#allocation5 + $0x30] sm:$0xff]   ;;  %s614_s0 = smov [#allocation7]  }
  0x1d   :  { %475 = vmatprep.subr.bf16.mxu0 %v528_v0  ;;  %507 = vmatprep.subr.bf16.mxu1 %v528_v0  ;;  %v530_v2 = vld [vmem:[#allocation5 + $0x28] sm:$0xff]   ;;  %v531_v3 = vld [vmem:[#allocation5 + $0x20] sm:$0xff]   ;;  %v532_v6 = vld [vmem:[#allocation5 + $0x18] sm:$0xff]   ;;  %s351_s1 = sshll.u32 %s614_s0, 4  ;;  %s352_s1 = int_to_ptr.vmem [resolvable:$true] %s351_s1 }
  0x1e   :  { %476 = vmatpush3.bf16.msra.mxu0 %v528_v0  ;;  %515 = vmatpush3.bf16.msra.mxu1 %v528_v0  ;;  %v536_v4 = vld [vmem:[#allocation2] sm:$0xff]   ;;  %v533_v7 = vld [vmem:[#allocation5 + $0x10] sm:$0xff]   ;;  %v534_v8 = vld [vmem:[#allocation5 + $0x8] sm:$0xff]   ;;  %s584_s21 = scalar_lea.vmem %s352_s1, 1024  ;;  %p589_p11 = scmp.lt.s32.totalorder %s352_s1, %s352_s1 }
  0x1f   :  { %477 = vmatprep.subr.bf16.mxu0 %v529_v1  ;;  %508 = vmatprep.subr.bf16.mxu1 %v529_v1  ;;  %v537_v5 = vld [vmem:[#allocation2 + $0x20] sm:$0xff]   ;;  %v538_v10 = vld [vmem:[#allocation2 + $0x8] sm:$0xff]   ;;  %v540_v12 = vld [vmem:[#allocation2 + $0x10] sm:$0xff]   ;;  %p585_p10 = scmp.ne.s32.totalorder %s352_s1, %s584_s21  ;;  %p590_p12 = scmp.lt.s32.totalorder %s584_s21, %s584_s21 }
  0x20   :  { %491 = vmatprep.mubr.bf16.mxu0 %v536_v4  ;;  %499 = vmatprep.mubr.bf16.mxu1 %v537_v5  ;;  %v535_v9 = vld [vmem:[#allocation5] sm:$0xff]   ;;  %v539_v11 = vld [vmem:[#allocation2 + $0x28] sm:$0xff]   ;;  %v541_v13 = vld [vmem:[#allocation2 + $0x30] sm:$0xff]  }
  0x21   :  { %v542_v14 = vld [vmem:[#allocation2 + $0x18] sm:$0xff]   ;;  %p591_p13 = por %p590_p12, %p589_p11 }
  0x22   :  { %478 = vmatpush3.bf16.msra.mxu0 %v529_v1  ;;  %516 = vmatpush3.bf16.msra.mxu1 %v529_v1  ;;  %v543_v15 = vld [vmem:[#allocation2 + $0x38] sm:$0xff]  }
  0x23   :  { %479 = vmatprep.subr.bf16.mxu0 %v530_v2  ;;  %509 = vmatprep.subr.bf16.mxu1 %v530_v2  ;;  %p592_p0 = pnand %p591_p13, %p585_p10 }
  0x26   :  { %480 = vmatpush3.bf16.msra.mxu0 %v530_v2  ;;  %517 = vmatpush3.bf16.msra.mxu1 %v530_v2 }
  0x27   :  { %481 = vmatprep.subr.bf16.mxu0 %v531_v3  ;;  %510 = vmatprep.subr.bf16.mxu1 %v531_v3 }
  0x2a   :  { %482 = vmatpush3.bf16.msra.mxu0 %v531_v3  ;;  %518 = vmatpush3.bf16.msra.mxu1 %v531_v3 }
  0x2b   :  { %483 = vmatprep.subr.bf16.mxu0 %v532_v6  ;;  %511 = vmatprep.subr.bf16.mxu1 %v532_v6 }
  0x2e   :  { %484 = vmatpush3.bf16.msra.mxu0 %v532_v6  ;;  %519 = vmatpush3.bf16.msra.mxu1 %v532_v6 }
  0x2f   :  { %485 = vmatprep.subr.bf16.mxu0 %v533_v7  ;;  %512 = vmatprep.subr.bf16.mxu1 %v533_v7 }
  0x32   :  { %486 = vmatpush3.bf16.msra.mxu0 %v533_v7  ;;  %520 = vmatpush3.bf16.msra.mxu1 %v533_v7 }
  0x33   :  { %487 = vmatprep.subr.bf16.mxu0 %v534_v8  ;;  %513 = vmatprep.subr.bf16.mxu1 %v534_v8 }
  0x36   :  { %488 = vmatpush3.bf16.msra.mxu0 %v534_v8  ;;  %521 = vmatpush3.bf16.msra.mxu1 %v534_v8 }
  0x37   :  { %489 = vmatprep.subr.bf16.mxu0 %v535_v9  ;;  %514 = vmatprep.subr.bf16.mxu1 %v535_v9 }
  0x3a   :  { %490 = vmatpush3.bf16.msra.mxu0 %v535_v9  ;;  %522 = vmatpush3.bf16.msra.mxu1 %v535_v9 }
  0x3d   :  { %492 = vmatmul.mubr.bf16.vlgmr.msra.gmra.mxu0 %v538_v10  ;;  %500 = vmatmul.mubr.bf16.vlgmr.msra.gmra.mxu1 %v539_v11 }
  0x3e   :  { %495 = vmatprep.mubr.bf16.mxu0 %v540_v12  ;;  %503 = vmatprep.mubr.bf16.mxu1 %v541_v13 }
  0x45   :  { %496 = vmatmul.mubr.bf16.gmra.mxu0 %v542_v14  ;;  %504 = vmatmul.mubr.bf16.gmra.mxu1 %v543_v15 }
  0xfd   :  { %v493_v16 = vpop.f32.mrf.mxu0  ;;  %v501_v17 = vpop.f32.mrf.mxu1 }
  0xff   :  { %v203_v18 = vpop.f32.mrf.mxu0  ;;  %v235_v19 = vpop.f32.mrf.mxu1 }
 0x101   :  { %v494_v20 = vpop.f32.mrf.mxu0  ;;  %v502_v21 = vpop.f32.mrf.mxu1 }
 0x102   :  { %v420_v22 = vpack.c.bf16 %v494_v20, %v493_v16  ;;  %v440_v23 = vpack.c.bf16 %v502_v21, %v501_v17 }
 0x103   :  { %v206_v24 = vpop.f32.mrf.mxu0  ;;  %v238_v25 = vpop.f32.mrf.mxu1 }
 0x104   :  { %452 = vst [vmem:[#allocation7 + $0x8] sm:$0xff] %v420_v22   ;;  %456 = vst [vmem:[#allocation7 + $0x28] sm:$0xff] %v440_v23   ;;  %v415_v26 = vpack.c.bf16 %v206_v24, %v203_v18  ;;  %v435_v27 = vpack.c.bf16 %v238_v25, %v235_v19 }
 0x105   :  { %v497_v28 = vpop.f32.mrf.mxu0  ;;  %v505_v29 = vpop.f32.mrf.mxu1 }
 0x106   :  { %416 = vst [vmem:[#allocation7] sm:$0xff] %v415_v26   ;;  %455 = vst [vmem:[#allocation7 + $0x20] sm:$0xff] %v435_v27  }
 0x107   :  { %v219_v30 = vpop.f32.mrf.mxu0  ;;  %v251_v31 = vpop.f32.mrf.mxu1 }
 0x109   :  { %v498_v32 = vpop.f32.mrf.mxu0  ;;  %v506_v33 = vpop.f32.mrf.mxu1 }
 0x10a   :  { %v430_v34 = vpack.c.bf16 %v498_v32, %v497_v28  ;;  %v450_v35 = vpack.c.bf16 %v506_v33, %v505_v29 }
 0x10b   :  { %v222_v36 = vpop.f32.mrf.mxu0  ;;  %v254_v37 = vpop.f32.mrf.mxu1 }
 0x10c   :  { %454 = vst [vmem:[#allocation7 + $0x18] sm:$0xff] %v430_v34   ;;  %458 = vst [vmem:[#allocation7 + $0x38] sm:$0xff] %v450_v35   ;;  %v425_v38 = vpack.c.bf16 %v222_v36, %v219_v30  ;;  %v445_v39 = vpack.c.bf16 %v254_v37, %v251_v31 }
 0x10e   :  { %453 = vst [vmem:[#allocation7 + $0x10] sm:$0xff] %v425_v38   ;;  %457 = vst [vmem:[#allocation7 + $0x30] sm:$0xff] %v445_v39  }
 0x10f   :  { %595 = shalt.err (!%p592_p0)
}
 0x110   :  { %357 = dma.vmem_to_hbm [thread:$0]  %s352_s1, 1024, %s650_s2, [#allocation4], %s611_s12, %s611_s12, %s612_s13  }
 0x111   :  { %608 = dma.done.wait [#allocation4], 1024  }
 0x112   :  { %609 = vsyncadd [#allocation4], 4294966272 }
 0x113   :  { %361 = vsyncpa [#allocation3], 1 }
 0x114   :  { %362 = vsyncpa [#allocation6], 1 }
 0x115   :  { %363 = vsyncpa [#allocation4], 1 }

</bundles_post_ra>
